<compile_context>
chip_gen: v5e
topology: v5e:2x2
jax: 0.10.0
libtpu: 0.0.40
codegen_flags: <defaults>
</compile_context>

<pallas_src>
import functools

import jax
import jax.numpy as jnp
from jax.experimental import pallas as pl
from jax.experimental.pallas import tpu as pltpu


# Scoped-VMEM budget: > v5e's 16 MiB default, well under v7x's 64 MiB physical.
_VMEM_LIMIT = 48 * 1024 * 1024
_TM_TARGET = 256    # row tile target (raise to 512 on v6e: 128 MiB VMEM)
_TN_TARGET = 1024   # column tile target


# ------------------------------ tiling helpers ------------------------------


def _col_tile(n, target=_TN_TARGET, align=128):
    """Largest `align`-multiple divisor of n that is <= target, else full n."""
    if n <= target:
        return n
    t = (target // align) * align
    while t >= align:
        if n % t == 0:
            return t
        t -= align
    return n   # no aligned divisor -> full dim (block == full array dim is legal)


def _row_tiling(m, target=_TM_TARGET, align=8):
    """Return (tile, padded_m): tile divides padded_m and is 8-aligned (or == m)."""
    if m <= target:
        return m, m
    t = (target // align) * align
    while t >= align:
        if m % t == 0:
            return t, m
        t -= align
    tile = (target // align) * align
    padded = ((m + tile - 1) // tile) * tile
    return tile, padded


def _pad_rows(x, padded_m):
    m = x.shape[0]
    if padded_m == m:
        return x
    return jnp.pad(x, ((0, padded_m - m), (0, 0)))


# ----------------------------- Pallas kernels -------------------------------


def _ln_matmul_kernel(x_ref, g_ref, b_ref, w_ref, bias_ref, o_ref, h_ref,
                      *, eps, activation):
    # LayerNorm prologue in f32, computed once per row tile (j == 0), reused for
    # all remaining N tiles via the bf16 VMEM scratch h_ref.
    @pl.when(pl.program_id(1) == 0)
    def _():
        x = x_ref[...].astype(jnp.float32)
        mu = jnp.mean(x, axis=-1, keepdims=True)
        xc = x - mu
        var = jnp.mean(xc * xc, axis=-1, keepdims=True)
        h = xc * jax.lax.rsqrt(var + eps) * g_ref[...] + b_ref[...]
        h_ref[...] = h.astype(jnp.bfloat16)

    acc = jnp.dot(h_ref[...], w_ref[...], preferred_element_type=jnp.float32)
    acc = acc + bias_ref[...]
    if activation == "quick_gelu":
        # CLIP QuickGELU: x * sigmoid(1.702 * x)
        acc = acc * jax.nn.sigmoid(1.702 * acc)
    o_ref[...] = acc.astype(o_ref.dtype)


def ln_matmul(x, g, b, w, bias, activation=None, eps=1e-5, out_dtype=None):
    """out = act(LayerNorm(x) @ w + bias); x:(M,K) f32, w:(K,N) bf16."""
    M, K = x.shape
    Kw, N = w.shape
    assert Kw == K
    out_dtype = x.dtype if out_dtype is None else out_dtype

    tm, Mp = _row_tiling(M)
    tn = _col_tile(N)
    x = _pad_rows(x, Mp)

    out = pl.pallas_call(
        functools.partial(_ln_matmul_kernel, eps=eps, activation=activation),
        out_shape=jax.ShapeDtypeStruct((Mp, N), out_dtype),
        grid_spec=pltpu.PrefetchScalarGridSpec(
            num_scalar_prefetch=0,
            grid=(Mp // tm, N // tn),
            in_specs=[
                pl.BlockSpec((tm, K), lambda i, j: (i, 0)),
                pl.BlockSpec((1, K), lambda i, j: (0, 0)),
                pl.BlockSpec((1, K), lambda i, j: (0, 0)),
                pl.BlockSpec((K, tn), lambda i, j: (0, j)),
                pl.BlockSpec((1, tn), lambda i, j: (0, j)),
            ],
            out_specs=pl.BlockSpec((tm, tn), lambda i, j: (i, j)),
            scratch_shapes=[pltpu.VMEM((tm, K), jnp.bfloat16)],
        ),
        compiler_params=pltpu.CompilerParams(
            # j must stay sequential per core so the LN scratch filled at j==0 is valid.
            dimension_semantics=("parallel", "arbitrary"),
            vmem_limit_bytes=_VMEM_LIMIT),
    )(x, g.reshape(1, K), b.reshape(1, K), w, bias.reshape(1, N))
    return out if Mp == M else out[:M]


def _matmul_bias_residual_kernel(x_ref, w_ref, bias_ref, r_ref, o_ref):
    acc = jnp.dot(x_ref[...].astype(jnp.bfloat16), w_ref[...],
                  preferred_element_type=jnp.float32)
    acc = acc + bias_ref[...] + r_ref[...].astype(jnp.float32)
    o_ref[...] = acc.astype(o_ref.dtype)


def matmul_bias_residual(x, w, bias, residual):
    """out = x @ w + bias + residual; x:(M,K) bf16/f32, w:(K,N) bf16, residual f32."""
    M, K = x.shape
    Kw, N = w.shape
    assert Kw == K and residual.shape == (M, N)

    tm, Mp = _row_tiling(M)
    tn = _col_tile(N)
    x = _pad_rows(x, Mp)
    residual_p = _pad_rows(residual, Mp)

    out = pl.pallas_call(
        _matmul_bias_residual_kernel,
        out_shape=jax.ShapeDtypeStruct((Mp, N), residual.dtype),
        grid_spec=pltpu.PrefetchScalarGridSpec(
            num_scalar_prefetch=0,
            grid=(Mp // tm, N // tn),
            in_specs=[
                pl.BlockSpec((tm, K), lambda i, j: (i, 0)),
                pl.BlockSpec((K, tn), lambda i, j: (0, j)),
                pl.BlockSpec((1, tn), lambda i, j: (0, j)),
                pl.BlockSpec((tm, tn), lambda i, j: (i, j)),
            ],
            out_specs=pl.BlockSpec((tm, tn), lambda i, j: (i, j)),
        ),
        compiler_params=pltpu.CompilerParams(
            dimension_semantics=("parallel", "parallel"),
            vmem_limit_bytes=_VMEM_LIMIT),
    )(x, w, bias.reshape(1, N), residual_p)
    return out if Mp == M else out[:M]


def _attention_outproj_kernel(qkv_ref, m_ref, wo_ref, bo_ref, r_ref, o_ref,
                              *, num_heads):
    """Per-batch-element multi-head attention fused with out-proj+bias+residual.

    qkv_ref: (1, S, 3D) bf16 packed [q|k|v]; softmax scale already folded into q.
    """
    S = qkv_ref.shape[1]
    D = qkv_ref.shape[2] // 3
    Dh = D // num_heads
    mask = m_ref[...]                               # (S, S) additive causal, f32

    # Initialize the output block with residual + out-proj bias, then accumulate
    # each head's (softmax(qk^T) v) @ W_out[head] contribution straight into it
    # (no head concat, per-head live ranges bounded by the store).
    o_ref[0] = r_ref[0] + bo_ref[...]
    for h in range(num_heads):
        q = qkv_ref[0, :, h * Dh:(h + 1) * Dh]                  # (S, Dh) bf16
        k = qkv_ref[0, :, D + h * Dh:D + (h + 1) * Dh]
        v = qkv_ref[0, :, 2 * D + h * Dh:2 * D + (h + 1) * Dh]
        s = jax.lax.dot_general(q, k, (((1,), (1,)), ((), ())),
                                preferred_element_type=jnp.float32)   # (S, S)
        s = s + mask
        s = s - jnp.max(s, axis=-1, keepdims=True)
        p = jnp.exp(s)
        p = p * pl.reciprocal(jnp.sum(p, axis=-1, keepdims=True), approx=True)
        ctx = jnp.dot(p.astype(jnp.bfloat16), v,
                      preferred_element_type=jnp.float32)             # (S, Dh)
        o_ref[0] += jnp.dot(ctx.astype(jnp.bfloat16),
                            wo_ref[h * Dh:(h + 1) * Dh, :],
                            preferred_element_type=jnp.float32)       # (S, D)


def attention_outproj_residual(qkv, mask, w_out, b_out, residual, num_heads):
    """qkv: (B,S,3D) bf16; residual: (B,S,D) f32 -> new residual stream (B,S,D) f32."""
    B, S, D3 = qkv.shape
    D = D3 // 3
    return pl.pallas_call(
        functools.partial(_attention_outproj_kernel, num_heads=num_heads),
        out_shape=jax.ShapeDtypeStruct((B, S, D), residual.dtype),
        grid_spec=pltpu.PrefetchScalarGridSpec(
            num_scalar_prefetch=0,
            grid=(B,),
            in_specs=[
                pl.BlockSpec((1, S, D3), lambda b: (b, 0, 0)),
                pl.BlockSpec((S, S), lambda b: (0, 0)),
                pl.BlockSpec((D, D), lambda b: (0, 0)),
                pl.BlockSpec((1, D), lambda b: (0, 0)),
                pl.BlockSpec((1, S, D), lambda b: (b, 0, 0)),
            ],
            out_specs=pl.BlockSpec((1, S, D), lambda b: (b, 0, 0)),
        ),
        compiler_params=pltpu.CompilerParams(
            dimension_semantics=("parallel",),
            vmem_limit_bytes=_VMEM_LIMIT),
    )(qkv, mask, w_out, b_out.reshape(1, D), residual)


# --------------------------- model (glue in JAX) ----------------------------


def residual_attention_block(x2, p, mask, num_heads, B, S, D):
    """CLIP ResidualAttentionBlock on the flat (B*S, D) f32 residual stream."""
    # attention branch: (LN + in-proj, bf16 out) -> fused attn + out-proj + residual
    qkv = ln_matmul(x2, p["ln_1_g"], p["ln_1_b"], p["attn_in_w"], p["attn_in_b"],
                    out_dtype=jnp.bfloat16)
    x2 = attention_outproj_residual(
        qkv.reshape(B, S, 3 * D), mask, p["attn_out_w"], p["attn_out_b"],
        x2.reshape(B, S, D), num_heads,
    ).reshape(B * S, D)

    # MLP branch: (LN + fc + QuickGELU, bf16 out) -> (proj + bias + residual)
    h = ln_matmul(x2, p["ln_2_g"], p["ln_2_b"], p["mlp_fc_w"], p["mlp_fc_b"],
                  activation="quick_gelu", out_dtype=jnp.bfloat16)
    x2 = matmul_bias_residual(h, p["mlp_proj_w"], p["mlp_proj_b"], x2)
    return x2


def text_encoder_forward(prompts, tokenized_prompts, params, num_heads):
    """prompts: (B, S, D) float32 embeddings; tokenized_prompts: (B, S) int32."""
    B, S, D = prompts.shape

    # x = prompts + positional_embedding (trivial elementwise add -> plain JAX/XLA)
    x = prompts + params["positional_embedding"].astype(prompts.dtype)

    # transformer (batch-first; the two permutes in PyTorch are layout no-ops here)
    x2 = x.reshape(B * S, D)
    for lp in params["layers"]:
        x2 = residual_attention_block(x2, lp, params["attn_mask"], num_heads, B, S, D)
    x = x2.reshape(B, S, D)

    # Pool at the EOT token (argmax of token ids), then fused ln_final + projection.
    # (LayerNorm is per-row, so gather-then-LN == LN-then-gather.)
    eot_idx = jnp.argmax(tokenized_prompts, axis=-1)               # (B,)
    pooled = x[jnp.arange(B), eot_idx]                             # (B, D)
    E = params["text_projection"].shape[1]
    zero_bias = jnp.zeros((E,), jnp.float32)
    return ln_matmul(pooled, params["ln_final_g"], params["ln_final_b"],
                     params["text_projection"], zero_bias)


# ------------------------------ parameter init ------------------------------


def init_params(key, seq_len, width, num_layers, embed_dim, num_heads):
    keys = jax.random.split(key, 2 + num_layers)
    p = {
        "positional_embedding": 0.01
        * jax.random.normal(keys[0], (seq_len, width), jnp.float32),
        "ln_final_g": jnp.ones((width,), jnp.float32),
        "ln_final_b": jnp.zeros((width,), jnp.float32),
        # matmul weights stored bf16 (MXU-native, halves HBM/VMEM traffic);
        # biases / LN params / mask stay f32.
        "text_projection": ((width ** -0.5)
                            * jax.random.normal(keys[1], (width, embed_dim),
                                                jnp.float32)).astype(jnp.bfloat16),
        # CLIP causal attention mask: -inf strictly above the diagonal (kept f32).
        "attn_mask": jnp.triu(
            jnp.full((seq_len, seq_len), -jnp.inf, jnp.float32), k=1
        ),
        "layers": [],
    }
    head_dim = width // num_heads
    scale = head_dim ** -0.5
    for l in range(num_layers):
        lk = jax.random.split(keys[2 + l], 6)
        s = 0.05
        attn_in_w = s * jax.random.normal(lk[0], (width, 3 * width), jnp.float32)
        attn_in_b = jnp.zeros((3 * width,), jnp.float32)
        # Fold the 1/sqrt(head_dim) softmax scale into the q columns / bias (host-side
        # weight transform; semantics-preserving, removes an (S,S) multiply per head).
        attn_in_w = attn_in_w.at[:, :width].multiply(scale)
        attn_in_b = attn_in_b.at[:width].multiply(scale)
        p["layers"].append(
            {
                "ln_1_g": jnp.ones((width,), jnp.float32),
                "ln_1_b": jnp.zeros((width,), jnp.float32),
                "attn_in_w": attn_in_w.astype(jnp.bfloat16),
                "attn_in_b": attn_in_b,
                "attn_out_w": (s * jax.random.normal(
                    lk[1], (width, width), jnp.float32)).astype(jnp.bfloat16),
                "attn_out_b": jnp.zeros((width,), jnp.float32),
                "ln_2_g": jnp.ones((width,), jnp.float32),
                "ln_2_b": jnp.zeros((width,), jnp.float32),
                "mlp_fc_w": (s * jax.random.normal(
                    lk[2], (width, 4 * width), jnp.float32)).astype(jnp.bfloat16),
                "mlp_fc_b": jnp.zeros((4 * width,), jnp.float32),
                "mlp_proj_w": (s * jax.random.normal(
                    lk[3], (4 * width, width), jnp.float32)).astype(jnp.bfloat16),
                "mlp_proj_b": jnp.zeros((width,), jnp.float32),
            }
        )
    return p


# ----------------------------------- main ------------------------------------


if __name__ == "__main__":
    B, S, D, H, L, E = 2, 8, 32, 4, 2, 32   # batch, seq, width, heads, layers, embed

    key = jax.random.PRNGKey(0)
    k_prompts, k_tokens, k_params = jax.random.split(key, 3)

    params = init_params(k_params, S, D, L, E, H)

    # prompts are already-embedded token sequences (as in CoOp-style usage).
    prompts = 0.02 * jax.random.normal(k_prompts, (B, S, D), jnp.float32)

    # synthetic token ids with an "EOT" (max-id) token at different positions.
    tokenized_prompts = jax.random.randint(k_tokens, (B, S), 1, 100, dtype=jnp.int32)
    eot_positions = jnp.array([S - 1, S - 3], dtype=jnp.int32)
    tokenized_prompts = tokenized_prompts.at[jnp.arange(B), eot_positions].set(1000)

    out = text_encoder_forward(prompts, tokenized_prompts, params, H)
    out = jax.block_until_ready(out)

    assert out.shape == (B, E)
    assert bool(jnp.all(jnp.isfinite(out)))
    print("KERNEL_OK")
</pallas_src>

<mosaic_0001>
module attributes {stable_mosaic.version = 11 : i64} {
  func.func @_ln_matmul_kernel(%arg0: i32, %arg1: i32, %arg2: memref<16x32xf32, #tpu.memory_space<vmem>>, %arg3: memref<1x32xf32, #tpu.memory_space<vmem>>, %arg4: memref<1x32xf32, #tpu.memory_space<vmem>>, %arg5: memref<32x96xbf16, #tpu.memory_space<vmem>>, %arg6: memref<1x96xf32, #tpu.memory_space<vmem>>, %arg7: memref<16x96xbf16, #tpu.memory_space<vmem>>, %arg8: memref<16x32xbf16, #tpu.memory_space<vmem>>) attributes {dimension_semantics = [#tpu.dimension_semantics<parallel>, #tpu.dimension_semantics<arbitrary>], iteration_bounds = array<i64: 1, 1>, scalar_prefetch = 0 : i64, scratch_operands = 1 : i64, tpu.core_type = #tpu.core_type<tc>, window_params = [{transform_indices = @transform_0, window_bounds = array<i64: 16, 32>}, {pipeline_mode = #tpu.pipeline_mode<synchronous>, transform_indices = @transform_1, window_bounds = array<i64: 1, 32>}, {pipeline_mode = #tpu.pipeline_mode<synchronous>, transform_indices = @transform_2, window_bounds = array<i64: 1, 32>}, {transform_indices = @transform_3, window_bounds = array<i64: 32, 96>}, {transform_indices = @transform_4, window_bounds = array<i64: 1, 96>}, {transform_indices = @transform_5, window_bounds = array<i64: 16, 96>}]} {
    %c0_i32 = arith.constant 0 : i32
    %0 = arith.cmpi eq, %arg1, %c0_i32 : i32
    %1 = arith.extui %0 : i1 to i32
    %c0_i32_0 = arith.constant 0 : i32
    %2 = arith.cmpi ne, %1, %c0_i32_0 : i32
    scf.if %2 {
      %c0_8 = arith.constant 0 : index
      %c0_9 = arith.constant 0 : index
      %11 = vector.load %arg2[%c0_8, %c0_9] : memref<16x32xf32, #tpu.memory_space<vmem>>, vector<16x32xf32>
      %cst_10 = arith.constant dense<0.000000e+00> : vector<16xf32>
      %12 = vector.multi_reduction <add>, %11, %cst_10 [1] : vector<16x32xf32> to vector<16xf32>
      %13 = vector.shape_cast %12 : vector<16xf32> to vector<16x1xf32>
      %cst_11 = arith.constant 3.200000e+01 : f32
      %14 = vector.broadcast %cst_11 : f32 to vector<16x1xf32>
      %15 = arith.divf %13, %14 : vector<16x1xf32>
      %16 = vector.broadcast %15 : vector<16x1xf32> to vector<16x32xf32>
      %17 = arith.subf %11, %16 : vector<16x32xf32>
      %18 = arith.mulf %17, %17 : vector<16x32xf32>
      %cst_12 = arith.constant dense<0.000000e+00> : vector<16xf32>
      %19 = vector.multi_reduction <add>, %18, %cst_12 [1] : vector<16x32xf32> to vector<16xf32>
      %20 = vector.shape_cast %19 : vector<16xf32> to vector<16x1xf32>
      %cst_13 = arith.constant 3.200000e+01 : f32
      %21 = vector.broadcast %cst_13 : f32 to vector<16x1xf32>
      %22 = arith.divf %20, %21 : vector<16x1xf32>
      %cst_14 = arith.constant 9.99999974E-6 : f32
      %23 = vector.broadcast %cst_14 : f32 to vector<16x1xf32>
      %24 = arith.addf %22, %23 : vector<16x1xf32>
      %25 = math.rsqrt %24 : vector<16x1xf32>
      %26 = vector.broadcast %25 : vector<16x1xf32> to vector<16x32xf32>
      %27 = arith.mulf %17, %26 : vector<16x32xf32>
      %c0_15 = arith.constant 0 : index
      %c0_16 = arith.constant 0 : index
      %28 = vector.load %arg3[%c0_15, %c0_16] : memref<1x32xf32, #tpu.memory_space<vmem>>, vector<1x32xf32>
      %29 = vector.broadcast %28 : vector<1x32xf32> to vector<16x32xf32>
      %30 = arith.mulf %27, %29 : vector<16x32xf32>
      %c0_17 = arith.constant 0 : index
      %c0_18 = arith.constant 0 : index
      %31 = vector.load %arg4[%c0_17, %c0_18] : memref<1x32xf32, #tpu.memory_space<vmem>>, vector<1x32xf32>
      %32 = vector.broadcast %31 : vector<1x32xf32> to vector<16x32xf32>
      %33 = arith.addf %30, %32 : vector<16x32xf32>
      %34 = arith.truncf %33 : vector<16x32xf32> to vector<16x32xbf16>
      %c0_19 = arith.constant 0 : index
      %c0_20 = arith.constant 0 : index
      %35 = vector.load %arg8[%c0_19, %c0_20] : memref<16x32xbf16, #tpu.memory_space<vmem>>, vector<16x32xbf16>
      tpu.vector_store %arg8[%c0_19, %c0_20], %34 {strides = array<i32>} : memref<16x32xbf16, #tpu.memory_space<vmem>>, vector<16x32xbf16>,
    } else {
    }
    %c0 = arith.constant 0 : index
    %c0_1 = arith.constant 0 : index
    %3 = vector.load %arg8[%c0, %c0_1] : memref<16x32xbf16, #tpu.memory_space<vmem>>, vector<16x32xbf16>
    %c0_2 = arith.constant 0 : index
    %c0_3 = arith.constant 0 : index
    %4 = vector.load %arg5[%c0_2, %c0_3] : memref<32x96xbf16, #tpu.memory_space<vmem>>, vector<32x96xbf16>
    %cst = arith.constant dense<0.000000e+00> : vector<16x96xf32>
    %5 = tpu.matmul %3, %4, %cst {dimension_numbers = #tpu.dot_dimension_numbers<[1], [0], [0], [1], [0, 0, 1, 1], [], []>} : vector<16x32xbf16>, vector<32x96xbf16>, vector<16x96xf32> -> vector<16x96xf32>
    %c0_4 = arith.constant 0 : index
    %c0_5 = arith.constant 0 : index
    %6 = vector.load %arg6[%c0_4, %c0_5] : memref<1x96xf32, #tpu.memory_space<vmem>>, vector<1x96xf32>
    %7 = vector.broadcast %6 : vector<1x96xf32> to vector<16x96xf32>
    %8 = arith.addf %5, %7 : vector<16x96xf32>
    %9 = arith.truncf %8 : vector<16x96xf32> to vector<16x96xbf16>
    %c0_6 = arith.constant 0 : index
    %c0_7 = arith.constant 0 : index
    %10 = vector.load %arg7[%c0_6, %c0_7] : memref<16x96xbf16, #tpu.memory_space<vmem>>, vector<16x96xbf16>
    tpu.vector_store %arg7[%c0_6, %c0_7], %9 {strides = array<i32>} : memref<16x96xbf16, #tpu.memory_space<vmem>>, vector<16x96xbf16>,
    return
  }
  func.func @transform_0(%arg0: i32, %arg1: i32) -> (i32, i32) {
    %c0_i32 = arith.constant 0 : i32
    %c0_i32_0 = arith.constant 0 : i32
    return %arg0, %c0_i32 : i32, i32
  }
  func.func @transform_1(%arg0: i32, %arg1: i32) -> (i32, i32) {
    %c0_i32 = arith.constant 0 : i32
    %c0_i32_0 = arith.constant 0 : i32
    %c0_i32_1 = arith.constant 0 : i32
    return %c0_i32, %c0_i32_0 : i32, i32
  }
  func.func @transform_2(%arg0: i32, %arg1: i32) -> (i32, i32) {
    %c0_i32 = arith.constant 0 : i32
    %c0_i32_0 = arith.constant 0 : i32
    %c0_i32_1 = arith.constant 0 : i32
    return %c0_i32, %c0_i32_0 : i32, i32
  }
  func.func @transform_3(%arg0: i32, %arg1: i32) -> (i32, i32) {
    %c0_i32 = arith.constant 0 : i32
    %c0_i32_0 = arith.constant 0 : i32
    return %c0_i32, %arg1 : i32, i32
  }
  func.func @transform_4(%arg0: i32, %arg1: i32) -> (i32, i32) {
    %c0_i32 = arith.constant 0 : i32
    %c0_i32_0 = arith.constant 0 : i32
    return %c0_i32, %arg1 : i32, i32
  }
  func.func @transform_5(%arg0: i32, %arg1: i32) -> (i32, i32) {
    %c0_i32 = arith.constant 0 : i32
    return %arg0, %arg1 : i32, i32
  }
}

</mosaic_0001>

<bundles_post_ra>
// kernel: tpu_custom_call.1
= control target key start
LH: loop header
LB: loop body
LE: loop exit
PB: predicated region body
PF: predicated region fallthrough
CT: control target
= control target key end

     0   :  { %10 = vsyncpa [#allocation4], 0  ;;  %s416_s0 = inlined_call_operand.hbm [shape: f32[16,32], index: 0, kind: input, shape index: {}]   ;;  %s417_s1 = inlined_call_operand.hbm [shape: f32[1,32], index: 1, kind: input, shape index: {}]   ;;  %s418_s2 = inlined_call_operand.vmem [shape: f32[1,32], index: 2, kind: input, shape index: {}]   ;;  %s419_s3 = inlined_call_operand.hbm [shape: bf16[32,96], index: 3, kind: input, shape index: {}]   ;;  %s420_s4 = inlined_call_operand.vmem [shape: f32[1,96], index: 4, kind: input, shape index: {}]   ;;  %s421_s5 = inlined_call_operand.hbm [shape: bf16[16,96], index: 5, kind: output, shape index: {}]  }
   0x1   :  { %11 = vsyncpa [#allocation7], 0  ;;  %s31_s20 = sshll.u32 %s417_s1, 4  ;;  %s32_s20 = int_to_ptr.hbm [resolvable:$true] %s31_s20 }
   0x2   :  { %12 = vsyncpa [#allocation5], 0  ;;  %s348_s21 = smov [#allocation6]   ;;  %s17_s25 = sshll.u32 %s416_s0, 4  ;;  %s18_s25 = int_to_ptr.hbm [resolvable:$true] %s17_s25 }
   0x3   :  { %s33_s22 = sshll.u32 %s348_s21, 4  ;;  %s349_s26 = smov [#allocation3]   ;;  %s34_s22 = int_to_ptr.vmem [resolvable:$true] %s33_s22 }
   0x4   :  { %36 = dma.hbm_to_vmem [thread:$0]  %s32_s20, 16, %s34_s22, [#allocation7]  }
   0x5   :  { %s19_s27 = sshll.u32 %s349_s26, 4  ;;  %s350_s28 = smov 128   ;;  %s20_s27 = int_to_ptr.vmem [resolvable:$true] %s19_s27 }
   0x6   :  { %s351_s29 = smov 8   ;;  %s43_s1 = sshll.u32 %s419_s3, 4  ;;  %s44_s1 = int_to_ptr.hbm [resolvable:$true] %s43_s1 }
   0x7   :  { %25 = dma.hbm_to_vmem [thread:$0]  %s18_s25, 256, %s20_s27, [#allocation4], %s350_s28, %s350_s28, %s351_s29  }
   0x8   :  { %s352_s7 = smov [#allocation8]   ;;  %s353_s9 = smov 64  }
   0x9   :  { %s45_s8 = sshll.u32 %s352_s7, 4  ;;  %s354_s10 = smov 4   ;;  %s46_s8 = int_to_ptr.vmem [resolvable:$true] %s45_s8 }
   0xa   :  { %51 = dma.hbm_to_vmem [thread:$0]  %s44_s1, 256, %s46_s8, [#allocation7], %s353_s9, %s353_s9, %s354_s10  }
   0xb   :  { %342 = dma.done.wait [#allocation4], 256  }
   0xc   :  { %343 = vsyncadd [#allocation4], 4294967040 }
   0xd   :  { %344 = dma.done.wait [#allocation7], 272  }
   0xe   :  { %345 = vsyncadd [#allocation7], 4294967024  ;;  %vm73_vm0 = vcmask 261120   ;;  %v71_v0 = vld [vmem:[#allocation3] sm:$0xff]  ;;  %v72_v2 = vld [vmem:[#allocation3 + $0x8] sm:$0xff]  ;;  %v355_v4 = vmov 32.0  }
   0xf   :  { %v74_v1 = vsel %vm73_vm0, %v71_v0, 0.0  ;;  %v77_v3 = vsel %vm73_vm0, %v72_v2, 0.0  ;;  %240 = vrcp.f32 %v355_v4  ;;  %v227_v24 = vld [vmem:[#allocation8 + $0x8] sm:$0xff]  ;;  %v226_v27 = vld [vmem:[#allocation8] sm:$0xff]  ;;  %v237_v37 = vld [vmem:[#allocation6] ss:$0 sm:$0xff] }
  0x10   :  { %75 = vadd.xlane.f32.xlu0 %v74_v1  ;;  %179 = vmatpush.bf16.msra.mxu0 %v227_v24  ;;  %v238_v40 = vld [vmem:[%s418_s2] ss:$0 sm:$0xff]  ;;  %vm139_vm6 = vcmask 257024   ;;  %vm189_vm9 = vcmask 781312   ;;  %s356_s12 = smov [#allocation9]   ;;  %s198_s16 = sshll.u32 %s421_s5, 4  ;;  %s199_s16 = int_to_ptr.hbm [resolvable:$true] %s198_s16 }
  0x11   :  { %v239_v54 = vld [vmem:[%s420_s4] ss:$0 sm:$0xff]  ;;  %s196_s13 = sshll.u32 %s356_s12, 4  ;;  %s197_s13 = int_to_ptr.vmem [resolvable:$true] %s196_s13 }
  0x14   :  { %180 = vmatpush.bf16.msra.mxu0 %v226_v27 }
  0x15   :  { %v241_v5 = vpop.eup %240 }
  0x16   :  { %v81_v6 = vmul.f32 32.0, %v241_v5  ;;  %vm85_vm1 = vweird.f32 %v241_v5 }
  0x18   :  { %78 = vadd.xlane.f32.xlu0 %v77_v3  ;;  %v82_v7 = vsub.f32 1.0, %v81_v6 }
  0x1a   :  { %v83_v8 = vmul.f32 %v241_v5, %v82_v7 }
  0x1c   :  { %v84_v9 = vadd.f32 %v241_v5, %v83_v8 }
  0x1e   :  { %v86_v10 = vsel %vm85_vm1, %v241_v5, %v84_v9 }
  0x83   :  { %v76_v11 = vpop.xlane.xlu0 %75 }
  0x84   :  { %v87_v12 = vmul.f32 %v86_v10, %v76_v11 }
  0x86   :  { %v89_v13 = vsub.f32 %v71_v0, %v87_v12 }
  0x88   :  { %v91_v14 = vmul.f32 %v89_v13, %v89_v13 }
  0x8a   :  { %v93_v15 = vsel %vm73_vm0, %v91_v14, 0.0 }
  0x8b   :  { %94 = vadd.xlane.f32.xlu1 %v93_v15  ;;  %v79_v16 = vpop.xlane.xlu0 %78 }
  0x8c   :  { %v88_v17 = vmul.f32 %v86_v10, %v79_v16 }
  0x8e   :  { %v90_v18 = vsub.f32 %v72_v2, %v88_v17 }
  0x90   :  { %v92_v19 = vmul.f32 %v90_v18, %v90_v18 }
  0x92   :  { %v96_v20 = vsel %vm73_vm0, %v92_v19, 0.0 }
  0x93   :  { %97 = vadd.xlane.f32.xlu1 %v96_v20 }
  0xfe   :  { %v95_v21 = vpop.xlane.xlu1 %94 }
  0xff   :  { %v99_v22 = vmul.f32 %v95_v21, %v86_v10 }
 0x101   :  { %v101_v23 = vadd.f32 1e-05, %v99_v22 }
 0x103   :  { %242 = vrsqrt.f32 %v101_v23  ;;  %vm109_vm3 = vweird.f32 %v101_v23 }
 0x106   :  { %v98_v25 = vpop.xlane.xlu1 %97 }
 0x107   :  { %v100_v26 = vmul.f32 %v98_v25, %v86_v10 }
 0x109   :  { %v243_v28 = vpop.eup %242  ;;  %v102_v29 = vadd.f32 1e-05, %v100_v26 }
 0x10a   :  { %v104_v30 = vmul.f32 %v243_v28, %v101_v23  ;;  %vm110_vm2 = vweird.f32 %v243_v28 }
 0x10b   :  { %244 = vrsqrt.f32 %v102_v29  ;;  %vm111_vm4 = vmor %vm109_vm3, %vm110_vm2  ;;  %vm119_vm7 = vweird.f32 %v102_v29 }
 0x10c   :  { %v105_v31 = vmul.f32 %v243_v28, %v104_v30 }
 0x10e   :  { %v106_v32 = vmul.f32 0.5, %v105_v31 }
 0x110   :  { %v107_v33 = vsub.f32 1.5, %v106_v32 }
 0x111   :  { %v245_v34 = vpop.eup %244 }
 0x112   :  { %v108_v35 = vmul.f32 %v243_v28, %v107_v33  ;;  %v114_v36 = vmul.f32 %v245_v34, %v102_v29  ;;  %vm120_vm5 = vweird.f32 %v245_v34 }
 0x113   :  { %vm121_vm8 = vmor %vm119_vm7, %vm120_vm5 }
 0x114   :  { %v112_v38 = vsel %vm111_vm4, %v243_v28, %v108_v35  ;;  %v115_v39 = vmul.f32 %v245_v34, %v114_v36 }
 0x115   :  { %v123_v41 = vmul.f32 %v112_v38, %v89_v13 }
 0x116   :  { %v116_v42 = vmul.f32 0.5, %v115_v39 }
 0x117   :  { %v129_v43 = vmul.f32 %v237_v37, %v123_v41 }
 0x118   :  { %v117_v44 = vsub.f32 1.5, %v116_v42 }
 0x119   :  { %v135_v45 = vadd.f32 %v238_v40, %v129_v43 }
 0x11a   :  { %v118_v46 = vmul.f32 %v245_v34, %v117_v44 }
 0x11b   :  { %v137_v47 = vpack.c.bf16 %v135_v45, %v135_v45 }
 0x11c   :  { %v122_v48 = vsel %vm121_vm8, %v245_v34, %v118_v46 }
 0x11d   :  { %140 = vst.msk [vmem:[#allocation2] sm:$0xf] %vm139_vm6, %v137_v47  ;;  %v124_v49 = vmul.f32 %v122_v48, %v90_v18 }
 0x11f   :  { %v130_v50 = vmul.f32 %v237_v37, %v124_v49 }
 0x121   :  { %v136_v51 = vadd.f32 %v238_v40, %v130_v50 }
 0x123   :  { %v138_v52 = vpack.c.bf16 %v136_v51, %v136_v51 }
 0x125   :  { %141 = vst.msk [vmem:[#allocation2 + $0x4] sm:$0xf] %vm139_vm6, %v138_v52 }
 0x12c   :  { %v225_v53 = vld [vmem:[#allocation2] sm:$0xff] }
 0x12d   :  { %224 = vmatmul.msk.bf16.vlgmr.msra.gmra.mxu0 %vm73_vm0, %v225_v53 }
 0x1aa   :  { %v182_v55 = vpop.f32.mrf.mxu0 }
 0x1ab   :  { %v183_v56 = vadd.f32 %v239_v54, %v182_v55 }
 0x1ad   :  { %v187_v57 = vpack.c.bf16 %v183_v56, %v183_v56 }
 0x1af   :  { %190 = vst.msk [vmem:[#allocation9] sm:$0xf] %vm189_vm9, %v187_v57 }
 0x1b2   :  { %v184_v58 = vpop.f32.mrf.mxu0 }
 0x1b3   :  { %v185_v59 = vadd.f32 %v239_v54, %v184_v58 }
 0x1b5   :  { %v188_v60 = vpack.c.bf16 %v185_v59, %v185_v59 }
 0x1b7   :  { %191 = vst.msk [vmem:[#allocation9 + $0x4] sm:$0xf] %vm189_vm9, %v188_v60 }
 0x1b8   :  { %204 = dma.vmem_to_hbm [thread:$0]  %s197_s13, 128, %s199_s16, [#allocation5], %s353_s9, %s353_s9, %s354_s10  }
 0x1b9   :  { %346 = dma.done.wait [#allocation5], 128  }
 0x1ba   :  { %347 = vsyncadd [#allocation5], 4294967168 }
 0x1bb   :  { %209 = vsyncpa [#allocation4], 1 }
 0x1bc   :  { %210 = vsyncpa [#allocation7], 1 }
 0x1bd   :  { %211 = vsyncpa [#allocation5], 1 }

</bundles_post_ra>
